<compile_context>
chip_gen: v6e
topology: v6e:2x2x1
jax: 0.10.0
libtpu: 0.0.40
codegen_flags: <defaults>
</compile_context>

<pallas_src>
import math

import jax
import jax.numpy as jnp
from jax.experimental import pallas as pl
from jax.experimental.pallas import tpu as pltpu


def _scale_kernel(x_ref, w_ref, o_ref):
    # x_ref: (tile_rows, tile_w) in x dtype; w_ref: (1, tile_w) f32.
    # Multiply in f32 (matches PyTorch's promoted mul), cast back to x dtype.
    o_ref[...] = (x_ref[...] * w_ref[...]).astype(o_ref.dtype)


_N_CORES = 2                      # v7x has 2 TensorCores per chip
_MULTICORE_MIN_BYTES = 4 << 20    # only force a multi-step grid above a few MiB

_BUDGET_CACHE = None


def _budgets():
    """(per-buffer tile bytes, scoped-VMEM limit) chosen per TPU generation."""
    global _BUDGET_CACHE
    if _BUDGET_CACHE is not None:
        return _BUDGET_CACHE
    try:
        vmem_cap = pltpu.get_tpu_info().vmem_capacity_bytes
    except Exception:
        vmem_cap = 64 << 20       # conservative default (v7x-class)
    if vmem_cap <= (64 << 20):
        # v7x-class: 64 MiB per TensorCore. 4 double-buffered tiles ~= 28 MiB.
        budgets = (7 << 20, 40 << 20)
    else:
        # v5e / v6e: 128 MiB VMEM. Larger tiles are admissible; gains are flat
        # past ~85% of HBM roofline so keep a moderate budget.
        budgets = (12 << 20, 64 << 20)
    _BUDGET_CACHE = budgets
    return budgets


def _pallas_scale_2d(x2d, w_row, *, alias_input=False):
    """x2d: (R, W); w_row: (1, W) float32. Returns x2d * w_row (row broadcast)."""
    R, W = x2d.shape
    itemsize = jnp.dtype(x2d.dtype).itemsize
    sub = 8 * max(1, 4 // itemsize)          # sublane multiple: 8 f32 / 16 bf16
    tile_bytes, vmem_limit = _budgets()

    rows_fit = tile_bytes // (W * itemsize)
    if rows_fit >= sub:
        # Normal case: full-width rows, tile only the row dimension.
        tile_w = W
        tile_rows = (rows_fit // sub) * sub
    else:
        # Very wide rows: tile the last dim too (128-multiple lane tile).
        tile_rows = sub
        tile_w = ((tile_bytes // (sub * itemsize)) // 128) * 128
        tile_w = max(128, min(tile_w, W))

    # Guarantee enough row steps for the 2-TC split on v7x (and to amortize the
    # ~0.35 us/step cost evenly) whenever the array is non-trivial.
    total_bytes = R * W * itemsize
    if total_bytes > _MULTICORE_MIN_BYTES:
        cap = pl.cdiv(R, 2 * _N_CORES)
        cap = max(sub, (cap // sub) * sub)
        tile_rows = min(tile_rows, cap)
    if tile_rows >= R:
        tile_rows = R                        # full-extent block is always legal

    grid = (pl.cdiv(R, tile_rows), pl.cdiv(W, tile_w))

    return pl.pallas_call(
        _scale_kernel,
        out_shape=jax.ShapeDtypeStruct((R, W), x2d.dtype),
        grid=grid,
        in_specs=[
            pl.BlockSpec((tile_rows, tile_w), lambda i, j: (i, j)),
            pl.BlockSpec((1, tile_w), lambda i, j: (0, j)),   # gamma row
        ],
        out_specs=pl.BlockSpec((tile_rows, tile_w), lambda i, j: (i, j)),
        input_output_aliases=({0: 0} if alias_input else {}),
        compiler_params=pltpu.CompilerParams(
            dimension_semantics=("parallel", "parallel"),
            vmem_limit_bytes=vmem_limit,
        ),
    )(x2d, w_row)


class DynamicLayerScalePallas:
    """JAX/Pallas port of DynamicLayerScale (forward only)."""

    def __init__(self, max_dim, init_values=1e-5, inplace=False):
        self.max_dim = max_dim
        # TODO(synk): inplace=True (x.mul_) cannot mutate in JAX; we alias the
        # output onto the input buffer instead (value-identical).
        self.inplace = inplace
        self.gamma = (jnp.asarray(init_values, jnp.float32)
                      * jnp.ones((max_dim,), jnp.float32))
        self.idx_in = None
        self._gamma_cache = None
        self._w_cache = {}

    def set_index(self, idx_in):
        self.idx_in = idx_in
        self._gamma_cache = None
        self._w_cache = {}

    def get_gamma(self):
        if self._gamma_cache is not None:
            return self._gamma_cache
        if isinstance(self.idx_in, (jnp.ndarray, jax.Array)):
            num = int(self.idx_in.shape[0])
            gamma = self.gamma if num == self.max_dim else self.gamma[self.idx_in]
        else:
            num = int(self.idx_in)
            gamma = self.gamma if num == self.max_dim else self.gamma[:num]
        self._gamma_cache = gamma
        return gamma

    def _w_row(self, g):
        w = self._w_cache.get(g)
        if w is None:
            gamma = self.get_gamma().astype(jnp.float32)
            w = (jnp.tile(gamma, g) if g > 1 else gamma).reshape(1, -1)
            self._w_cache[g] = w
        return w

    def __call__(self, x):
        gamma = self.get_gamma()
        num = int(gamma.shape[0])
        assert x.shape[-1] == num, "last dim of x must equal active width"

        orig_shape = x.shape
        x2d = x.reshape(-1, num)
        R = x2d.shape[0]
        alias = bool(self.inplace)

        # Lane-dense packing: fold g rows together so the kernel's last dim is
        # a multiple of 128 (g*num). Contiguous reshape => no data movement.
        g = 1
        if num % 128 != 0:
            g = math.lcm(num, 128) // num

        if g == 1:
            out = _pallas_scale_2d(x2d, self._w_row(1), alias_input=alias)
            return out.reshape(orig_shape)

        r_main = (R // g) * g
        if r_main == 0:
            # Tiny input (< g rows): a kernel launch is not worth it.
            out = (x2d * gamma.astype(jnp.float32)).astype(x.dtype)
            return out.reshape(orig_shape)

        x_main = x2d[:r_main].reshape(r_main // g, g * num)
        out_main = _pallas_scale_2d(
            x_main, self._w_row(g), alias_input=alias).reshape(r_main, num)

        if r_main == R:
            return out_main.reshape(orig_shape)

        # Remainder (< g rows): plain XLA multiply, then stitch back.
        out_rem = (x2d[r_main:] * gamma.astype(jnp.float32)).astype(x.dtype)
        out = jnp.concatenate([out_main, out_rem], axis=0)
        return out.reshape(orig_shape)


if __name__ == "__main__":
    key = jax.random.PRNGKey(0)
    k_init, k_x1, k_x2, k_x3 = jax.random.split(key, 4)

    max_dim = 32

    # init_values may be a tensor in the original module; use a non-trivial one
    # so the scale is actually exercised (gamma = init_values * ones(max_dim)).
    init_values = 1e-5 + 0.1 * jax.random.normal(k_init, (max_dim,), jnp.float32)
    mod = DynamicLayerScalePallas(max_dim, init_values=init_values)

    # Path 1: integer prefix index (active width 24 -> lane-packed to 384).
    active = 24
    mod.set_index(active)
    x = jax.random.normal(k_x1, (2, 8, active), jnp.float32)
    out = jax.block_until_ready(mod(x))
    ref = x * mod.get_gamma()
    assert out.shape == x.shape
    assert jnp.allclose(out, ref, atol=1e-6, rtol=1e-6), (
        float(jnp.max(jnp.abs(out - ref))))

    # Path 2: index-tensor gather (active width 16 -> lane-packed to 128).
    idx = jnp.array([0, 2, 4, 6, 8, 10, 12, 14, 16, 18, 20, 22, 1, 3, 5, 7],
                    jnp.int32)
    mod.set_index(idx)
    x2 = jax.random.normal(k_x2, (2, 8, idx.shape[0]), jnp.float32)
    out2 = jax.block_until_ready(mod(x2))
    ref2 = x2 * mod.get_gamma()
    assert out2.shape == x2.shape
    assert jnp.allclose(out2, ref2, atol=1e-6, rtol=1e-6), (
        float(jnp.max(jnp.abs(out2 - ref2))))

    # Path 3: row count not divisible by the fold factor -> lane-dense prefix
    # through the kernel + tiny XLA remainder (fallback path).
    mod.set_index(active)
    x3 = jax.random.normal(k_x3, (2, 9, active), jnp.float32)   # R=18, g=16
    out3 = jax.block_until_ready(mod(x3))
    ref3 = x3 * mod.get_gamma()
    assert out3.shape == x3.shape
    assert jnp.allclose(out3, ref3, atol=1e-6, rtol=1e-6), (
        float(jnp.max(jnp.abs(out3 - ref3))))

    print("KERNEL_OK")
</pallas_src>

<mosaic_0001>
module attributes {stable_mosaic.version = 11 : i64} {
  func.func @_scale_kernel(%arg0: i32, %arg1: i32, %arg2: memref<1x384xf32, #tpu.memory_space<vmem>>, %arg3: memref<1x384xf32, #tpu.memory_space<vmem>>, %arg4: memref<1x384xf32, #tpu.memory_space<vmem>>) attributes {dimension_semantics = [#tpu.dimension_semantics<parallel>, #tpu.dimension_semantics<parallel>], iteration_bounds = array<i64: 1, 1>, scalar_prefetch = 0 : i64, scratch_operands = 0 : i64, tpu.core_type = #tpu.core_type<tc>, window_params = [{transform_indices = @transform_0, window_bounds = array<i64: 1, 384>}, {transform_indices = @transform_1, window_bounds = array<i64: 1, 384>}, {transform_indices = @transform_2, window_bounds = array<i64: 1, 384>}]} {
    %c0 = arith.constant 0 : index
    %c0_0 = arith.constant 0 : index
    %0 = vector.load %arg2[%c0, %c0_0] : memref<1x384xf32, #tpu.memory_space<vmem>>, vector<1x384xf32>
    %c0_1 = arith.constant 0 : index
    %c0_2 = arith.constant 0 : index
    %1 = vector.load %arg3[%c0_1, %c0_2] : memref<1x384xf32, #tpu.memory_space<vmem>>, vector<1x384xf32>
    %2 = arith.mulf %0, %1 : vector<1x384xf32>
    %c0_3 = arith.constant 0 : index
    %c0_4 = arith.constant 0 : index
    %3 = vector.load %arg4[%c0_3, %c0_4] : memref<1x384xf32, #tpu.memory_space<vmem>>, vector<1x384xf32>
    tpu.vector_store %arg4[%c0_3, %c0_4], %2 {strides = array<i32>} : memref<1x384xf32, #tpu.memory_space<vmem>>, vector<1x384xf32>,
    return
  }
  func.func @transform_0(%arg0: i32, %arg1: i32) -> (i32, i32) {
    %c0_i32 = arith.constant 0 : i32
    return %arg0, %arg1 : i32, i32
  }
  func.func @transform_1(%arg0: i32, %arg1: i32) -> (i32, i32) {
    %c0_i32 = arith.constant 0 : i32
    %c0_i32_0 = arith.constant 0 : i32
    return %c0_i32, %arg1 : i32, i32
  }
  func.func @transform_2(%arg0: i32, %arg1: i32) -> (i32, i32) {
    %c0_i32 = arith.constant 0 : i32
    return %arg0, %arg1 : i32, i32
  }
}

</mosaic_0001>

<bundles_post_ra>
// kernel: tpu_custom_call.1
= control target key start
LH: loop header
LB: loop body
LE: loop exit
PB: predicated region body
PF: predicated region fallthrough
CT: control target
= control target key end

     0   :  { %7 = vsyncpa [#allocation3], 0  ;;  %s156_s0 = inlined_call_operand.hbm [shape: f32[1,384], index: 0, kind: input, shape index: {}]   ;;  %s157_s1 = inlined_call_operand.hbm [shape: f32[1,384], index: 1, kind: input, shape index: {}]   ;;  %s158_s2 = inlined_call_operand.hbm [shape: f32[1,384], index: 2, kind: output, shape index: {}]  }
   0x1   :  { %8 = vsyncpa [#allocation6], 0 }
   0x2   :  { %9 = vsyncpa [#allocation4], 0  ;;  %s129_s9 = smov [#allocation2]   ;;  %s130_s11 = smov [#allocation5]  }
   0x3   :  { %s16_s10 = sshll.u32 %s129_s9, 4  ;;  %s26_s12 = sshll.u32 %s130_s11, 4  ;;  %s17_s10 = int_to_ptr.vmem [resolvable:$true] %s16_s10  ;;  %s27_s12 = int_to_ptr.vmem [resolvable:$true] %s26_s12 }
   0x4   :  { %s71_s13 = scalar_lea.vmem %s17_s10, 48  ;;  %s75_s14 = scalar_lea.vmem %s17_s10, 64 }
   0x5   :  { %p72_p0 = scmp.ne.s32.totalorder %s17_s10, %s71_s13  ;;  %p76_p1 = scmp.lt.s32.totalorder %s17_s10, %s17_s10 }
   0x6   :  { %p77_p2 = scmp.lt.s32.totalorder %s75_s14, %s71_s13 }
   0x8   :  { %p78_p3 = por %p77_p2, %p76_p1 }
   0xa   :  { %p79_p4 = pnand %p78_p3, %p72_p0 }
   0xc   :  { %82 = shalt.err (!%p79_p4)
}
   0xd   :  { %19 = dma.hbm_to_vmem [thread:$0]  %s156_s0, 48, %s17_s10, [#allocation3]  }
   0xe   :  { %s91_s17 = scalar_lea.vmem %s27_s12, 48  ;;  %s95_s18 = scalar_lea.vmem %s27_s12, 64 }
   0xf   :  { %p92_p5 = scmp.ne.s32.totalorder %s27_s12, %s91_s17  ;;  %p96_p6 = scmp.lt.s32.totalorder %s27_s12, %s27_s12 }
  0x10   :  { %p97_p7 = scmp.lt.s32.totalorder %s95_s18, %s91_s17 }
  0x12   :  { %p98_p8 = por %p97_p7, %p96_p6 }
  0x14   :  { %p99_p9 = pnand %p98_p8, %p92_p5 }
  0x16   :  { %102 = shalt.err (!%p99_p9)
}
  0x17   :  { %29 = dma.hbm_to_vmem [thread:$0]  %s157_s1, 48, %s27_s12, [#allocation6]  }
  0x18   :  { %123 = dma.done.wait [#allocation3], 48  }
  0x19   :  { %124 = vsyncadd [#allocation3], 4294967248 }
  0x1a   :  { %125 = dma.done.wait [#allocation6], 48  }
  0x1b   :  { %126 = vsyncadd [#allocation6], 4294967248  ;;  %v39_v0 = vlaneseq  ;;  %s131_s21 = smov [#allocation7]   ;;  %v36_v1 = vld [vmem:[#allocation2] sm:$0x7] }
  0x1c   :  { %s50_s22 = sshll.u32 %s131_s21, 4  ;;  %v37_v2 = vld [vmem:[#allocation5] sm:$0x7]  ;;  %s51_s22 = int_to_ptr.vmem [resolvable:$true] %s50_s22 }
  0x1d   :  { %vm41_vm0 = vcmp.lt.s32.totalorder %v39_v0, 384  ;;  %v38_v3 = vmul.f32 %v37_v2, %v36_v1  ;;  %s103_s0 = scalar_lea.vmem %s51_s22, 48  ;;  %s107_s23 = scalar_lea.vmem %s51_s22, 64 }
  0x1e   :  { %p104_p10 = scmp.ne.s32.totalorder %s51_s22, %s103_s0  ;;  %p108_p11 = scmp.lt.s32.totalorder %s51_s22, %s51_s22 }
  0x1f   :  { %43 = vst.msk [vmem:[#allocation7] sm:$0x7] %vm41_vm0, %v38_v3  ;;  %p109_p12 = scmp.lt.s32.totalorder %s107_s23, %s103_s0 }
  0x21   :  { %p110_p13 = por %p109_p12, %p108_p11 }
  0x23   :  { %p111_p0 = pnand %p110_p13, %p104_p10 }
  0x25   :  { %114 = shalt.err (!%p111_p0)
}
  0x26   :  { %53 = dma.vmem_to_hbm [thread:$0]  %s51_s22, 48, %s158_s2, [#allocation4]  }
  0x27   :  { %127 = dma.done.wait [#allocation4], 48  }
  0x28   :  { %128 = vsyncadd [#allocation4], 4294967248 }
  0x29   :  { %57 = vsyncpa [#allocation3], 1 }
  0x2a   :  { %58 = vsyncpa [#allocation6], 1 }
  0x2b   :  { %59 = vsyncpa [#allocation4], 1 }

</bundles_post_ra>
